<compile_context>
chip_gen: v7x
topology: tpu7x:2x2x1
jax: 0.10.0
libtpu: 0.0.40
codegen_flags: <defaults>
</compile_context>

<pallas_src>
import jax
import jax.numpy as jnp
from jax import lax
from jax.experimental import pallas as pl
from jax.experimental.pallas import tpu as pltpu


def _round_up(x, m):
    return (x + m - 1) // m * m


def _make_conv_kernel(Cin, KH, KW, Wp, L_out, NT, R):
    """VPU-FMA 'same' conv on a lane-dense flattened, sublane-packed layout.

    Refs (single grid step, whole batch):
      x_ref  : (Cin, R, Lp)   padded plane (row stride Wp) flattened on lanes;
                              row r = n*Cout + co holds image n (replicated
                              over co so the merged batch*out-channel axis
                              fills the sublanes); rows >= N*Cout are zero.
      wb_ref : (R, NT + 1)    row r holds weight[co] flattened over (ci,kh,kw),
                              bias[co] in the last column.
      o_ref  : (R, L_out)     output, L_out = round_up(H*Wp, 128).
    """

    def kernel(x_ref, wb_ref, o_ref):
        wb = wb_ref[...].astype(jnp.float32)          # tiny (R, NT+1) table

        # One partial accumulator per input channel -> dep-chain of 9 FMAs
        # instead of 27; bias folded into the first partial's init.
        partials = []
        for ci in range(Cin):
            if ci == 0:
                acc = jnp.broadcast_to(wb[:, NT:NT + 1], (R, L_out))
            else:
                acc = jnp.zeros((R, L_out), jnp.float32)
            for kh in range(KH):
                for kw in range(KW):
                    t = (ci * KH + kh) * KW + kw       # weight column
                    off = kh * Wp + kw                 # static lane offset
                    slab = x_ref[ci, :, off:off + L_out].astype(jnp.float32)
                    acc = acc + wb[:, t:t + 1] * slab
            partials.append(acc)

        total = partials[0]
        for p in partials[1:]:
            total = total + p
        o_ref[...] = total.astype(o_ref.dtype)

    return kernel


@jax.jit
def conv2d_same_pallas(x_nchw, weight_oihw, bias):
    """Equivalent of nn.Conv2d(Cin, Cout, K, stride=1, padding=K//2)(x)."""
    N, Cin, H, W = x_nchw.shape
    Cout, Cin_w, KH, KW = weight_oihw.shape
    assert Cin == Cin_w
    ph, pw = KH // 2, KW // 2
    Hp, Wp = H + 2 * ph, W + 2 * pw
    NT = Cin * KH * KW

    L_valid = H * Wp                       # valid flattened output length
    L_out = _round_up(L_valid, 128)        # lane-dense, unmasked stores
    max_off = (KH - 1) * Wp + (KW - 1)     # largest tap offset
    Lp = _round_up(max_off + L_out, 128)   # input flat length (zero tail)
    R = _round_up(N * Cout, 8)             # merged (n, co) rows, pad to 8

    # ---- input prep (fused under this jit) ----
    x_pad = jnp.pad(x_nchw, ((0, 0), (0, 0), (ph, ph), (pw, pw)))
    x_flat = x_pad.reshape(N, Cin, Hp * Wp)
    x_rep = jnp.repeat(x_flat, Cout, axis=0)            # (N*Cout, Cin, Hp*Wp)
    x_rep = jnp.transpose(x_rep, (1, 0, 2))             # (Cin, N*Cout, Hp*Wp)
    x_rep = jnp.pad(x_rep,
                    ((0, 0), (0, R - N * Cout), (0, Lp - Hp * Wp)))

    # ---- weight/bias table: row r = n*Cout + co -> weight[co], bias[co] ----
    wb = jnp.concatenate(
        [weight_oihw.reshape(Cout, NT), bias.reshape(Cout, 1)], axis=1)
    wb = jnp.tile(wb, (N, 1))
    wb = jnp.pad(wb, ((0, R - N * Cout), (0, 0)))       # (R, NT + 1)

    kernel = _make_conv_kernel(Cin, KH, KW, Wp, L_out, NT, R)

    out_flat = pl.pallas_call(
        kernel,
        out_shape=jax.ShapeDtypeStruct((R, L_out), x_nchw.dtype),
        grid=(1,),                                       # whole batch, one step
        in_specs=[
            pl.BlockSpec((Cin, R, Lp), lambda i: (0, 0, 0)),
            pl.BlockSpec((R, NT + 1), lambda i: (0, 0)),
        ],
        out_specs=pl.BlockSpec((R, L_out), lambda i: (0, 0)),
        compiler_params=pltpu.CompilerParams(
            dimension_semantics=("arbitrary",)),
    )(x_rep, wb)

    # Drop sublane padding, lane padding and the Wp-stride garbage columns;
    # result is already NCHW.
    out = out_flat[:N * Cout, :L_valid].reshape(N, Cout, H, Wp)[:, :, :, :W]
    return out


if __name__ == "__main__":
    key = jax.random.PRNGKey(0)
    kx, kw_, kb = jax.random.split(key, 3)

    # Shapes implied by Conv2d(3, 3, 3, 1, 1): NCHW input with C=3.
    N, C, H, W = 2, 3, 16, 16
    x = jax.random.normal(kx, (N, C, H, W), dtype=jnp.float32)

    # Deterministic parameter init (PyTorch conv weight layout: OIHW).
    fan_in = C * 3 * 3
    bound = 1.0 / (fan_in ** 0.5)
    weight = jax.random.uniform(kw_, (3, C, 3, 3), jnp.float32, -bound, bound)
    bias = jax.random.uniform(kb, (3,), jnp.float32, -bound, bound)

    out = conv2d_same_pallas(x, weight, bias)
    out = jax.block_until_ready(out)

    # Cross-check against XLA's native convolution.
    ref = lax.conv_general_dilated(
        x, weight, window_strides=(1, 1), padding=((1, 1), (1, 1)),
        dimension_numbers=("NCHW", "OIHW", "NCHW"),
    ) + bias.reshape(1, 3, 1, 1)
    assert out.shape == (N, 3, H, W)
    assert jnp.max(jnp.abs(out - ref)) < 1e-4

    print("KERNEL_OK")
</pallas_src>

<mosaic_0001>
module attributes {stable_mosaic.version = 11 : i64} {
  func.func @kernel(%arg0: i32, %arg1: memref<3x8x512xf32, #tpu.memory_space<vmem>>, %arg2: memref<8x28xf32, #tpu.memory_space<vmem>>, %arg3: memref<8x384xf32, #tpu.memory_space<vmem>>) attributes {dimension_semantics = [#tpu.dimension_semantics<arbitrary>], iteration_bounds = array<i64: 1>, scalar_prefetch = 0 : i64, scratch_operands = 0 : i64, tpu.core_type = #tpu.core_type<tc>, window_params = [{pipeline_mode = #tpu.pipeline_mode<synchronous>, transform_indices = @transform_0, window_bounds = array<i64: 3, 8, 512>}, {pipeline_mode = #tpu.pipeline_mode<synchronous>, transform_indices = @transform_1, window_bounds = array<i64: 8, 28>}, {pipeline_mode = #tpu.pipeline_mode<synchronous>, transform_indices = @transform_2, window_bounds = array<i64: 8, 384>}]} {
    %c0 = arith.constant 0 : index
    %c0_0 = arith.constant 0 : index
    %0 = vector.load %arg2[%c0, %c0_0] : memref<8x28xf32, #tpu.memory_space<vmem>>, vector<8x28xf32>
    %1 = vector.extract_strided_slice %0 {offsets = [0, 27], sizes = [8, 1], strides = [1, 1]} : vector<8x28xf32> to vector<8x1xf32>
    %2 = vector.shape_cast %1 : vector<8x1xf32> to vector<8x1xf32>
    %3 = vector.broadcast %2 : vector<8x1xf32> to vector<8x384xf32>
    %c0_1 = arith.constant 0 : index
    %c0_2 = arith.constant 0 : index
    %c0_3 = arith.constant 0 : index
    %4 = vector.load %arg1[%c0_1, %c0_2, %c0_3] : memref<3x8x512xf32, #tpu.memory_space<vmem>>, vector<1x8x384xf32>
    %5 = vector.shape_cast %4 : vector<1x8x384xf32> to vector<8x384xf32>
    %6 = vector.extract_strided_slice %0 {offsets = [0, 0], sizes = [8, 1], strides = [1, 1]} : vector<8x28xf32> to vector<8x1xf32>
    %7 = vector.broadcast %6 : vector<8x1xf32> to vector<8x384xf32>
    %8 = arith.mulf %7, %5 : vector<8x384xf32>
    %9 = arith.addf %3, %8 : vector<8x384xf32>
    %c0_4 = arith.constant 0 : index
    %c0_5 = arith.constant 0 : index
    %c1 = arith.constant 1 : index
    %10 = vector.load %arg1[%c0_4, %c0_5, %c1] : memref<3x8x512xf32, #tpu.memory_space<vmem>>, vector<1x8x384xf32>
    %11 = vector.shape_cast %10 : vector<1x8x384xf32> to vector<8x384xf32>
    %12 = vector.extract_strided_slice %0 {offsets = [0, 1], sizes = [8, 1], strides = [1, 1]} : vector<8x28xf32> to vector<8x1xf32>
    %13 = vector.broadcast %12 : vector<8x1xf32> to vector<8x384xf32>
    %14 = arith.mulf %13, %11 : vector<8x384xf32>
    %15 = arith.addf %9, %14 : vector<8x384xf32>
    %c0_6 = arith.constant 0 : index
    %c0_7 = arith.constant 0 : index
    %c2 = arith.constant 2 : index
    %16 = vector.load %arg1[%c0_6, %c0_7, %c2] : memref<3x8x512xf32, #tpu.memory_space<vmem>>, vector<1x8x384xf32>
    %17 = vector.shape_cast %16 : vector<1x8x384xf32> to vector<8x384xf32>
    %18 = vector.extract_strided_slice %0 {offsets = [0, 2], sizes = [8, 1], strides = [1, 1]} : vector<8x28xf32> to vector<8x1xf32>
    %19 = vector.broadcast %18 : vector<8x1xf32> to vector<8x384xf32>
    %20 = arith.mulf %19, %17 : vector<8x384xf32>
    %21 = arith.addf %15, %20 : vector<8x384xf32>
    %c0_8 = arith.constant 0 : index
    %c0_9 = arith.constant 0 : index
    %c18 = arith.constant 18 : index
    %22 = vector.load %arg1[%c0_8, %c0_9, %c18] : memref<3x8x512xf32, #tpu.memory_space<vmem>>, vector<1x8x384xf32>
    %23 = vector.shape_cast %22 : vector<1x8x384xf32> to vector<8x384xf32>
    %24 = vector.extract_strided_slice %0 {offsets = [0, 3], sizes = [8, 1], strides = [1, 1]} : vector<8x28xf32> to vector<8x1xf32>
    %25 = vector.broadcast %24 : vector<8x1xf32> to vector<8x384xf32>
    %26 = arith.mulf %25, %23 : vector<8x384xf32>
    %27 = arith.addf %21, %26 : vector<8x384xf32>
    %c0_10 = arith.constant 0 : index
    %c0_11 = arith.constant 0 : index
    %c19 = arith.constant 19 : index
    %28 = vector.load %arg1[%c0_10, %c0_11, %c19] : memref<3x8x512xf32, #tpu.memory_space<vmem>>, vector<1x8x384xf32>
    %29 = vector.shape_cast %28 : vector<1x8x384xf32> to vector<8x384xf32>
    %30 = vector.extract_strided_slice %0 {offsets = [0, 4], sizes = [8, 1], strides = [1, 1]} : vector<8x28xf32> to vector<8x1xf32>
    %31 = vector.broadcast %30 : vector<8x1xf32> to vector<8x384xf32>
    %32 = arith.mulf %31, %29 : vector<8x384xf32>
    %33 = arith.addf %27, %32 : vector<8x384xf32>
    %c0_12 = arith.constant 0 : index
    %c0_13 = arith.constant 0 : index
    %c20 = arith.constant 20 : index
    %34 = vector.load %arg1[%c0_12, %c0_13, %c20] : memref<3x8x512xf32, #tpu.memory_space<vmem>>, vector<1x8x384xf32>
    %35 = vector.shape_cast %34 : vector<1x8x384xf32> to vector<8x384xf32>
    %36 = vector.extract_strided_slice %0 {offsets = [0, 5], sizes = [8, 1], strides = [1, 1]} : vector<8x28xf32> to vector<8x1xf32>
    %37 = vector.broadcast %36 : vector<8x1xf32> to vector<8x384xf32>
    %38 = arith.mulf %37, %35 : vector<8x384xf32>
    %39 = arith.addf %33, %38 : vector<8x384xf32>
    %c0_14 = arith.constant 0 : index
    %c0_15 = arith.constant 0 : index
    %c36 = arith.constant 36 : index
    %40 = vector.load %arg1[%c0_14, %c0_15, %c36] : memref<3x8x512xf32, #tpu.memory_space<vmem>>, vector<1x8x384xf32>
    %41 = vector.shape_cast %40 : vector<1x8x384xf32> to vector<8x384xf32>
    %42 = vector.extract_strided_slice %0 {offsets = [0, 6], sizes = [8, 1], strides = [1, 1]} : vector<8x28xf32> to vector<8x1xf32>
    %43 = vector.broadcast %42 : vector<8x1xf32> to vector<8x384xf32>
    %44 = arith.mulf %43, %41 : vector<8x384xf32>
    %45 = arith.addf %39, %44 : vector<8x384xf32>
    %c0_16 = arith.constant 0 : index
    %c0_17 = arith.constant 0 : index
    %c37 = arith.constant 37 : index
    %46 = vector.load %arg1[%c0_16, %c0_17, %c37] : memref<3x8x512xf32, #tpu.memory_space<vmem>>, vector<1x8x384xf32>
    %47 = vector.shape_cast %46 : vector<1x8x384xf32> to vector<8x384xf32>
    %48 = vector.extract_strided_slice %0 {offsets = [0, 7], sizes = [8, 1], strides = [1, 1]} : vector<8x28xf32> to vector<8x1xf32>
    %49 = vector.broadcast %48 : vector<8x1xf32> to vector<8x384xf32>
    %50 = arith.mulf %49, %47 : vector<8x384xf32>
    %51 = arith.addf %45, %50 : vector<8x384xf32>
    %c0_18 = arith.constant 0 : index
    %c0_19 = arith.constant 0 : index
    %c38 = arith.constant 38 : index
    %52 = vector.load %arg1[%c0_18, %c0_19, %c38] : memref<3x8x512xf32, #tpu.memory_space<vmem>>, vector<1x8x384xf32>
    %53 = vector.shape_cast %52 : vector<1x8x384xf32> to vector<8x384xf32>
    %54 = vector.extract_strided_slice %0 {offsets = [0, 8], sizes = [8, 1], strides = [1, 1]} : vector<8x28xf32> to vector<8x1xf32>
    %55 = vector.broadcast %54 : vector<8x1xf32> to vector<8x384xf32>
    %56 = arith.mulf %55, %53 : vector<8x384xf32>
    %57 = arith.addf %51, %56 : vector<8x384xf32>
    %cst = arith.constant 0.000000e+00 : f32
    %58 = vector.broadcast %cst : f32 to vector<8x384xf32>
    %c1_20 = arith.constant 1 : index
    %c0_21 = arith.constant 0 : index
    %c0_22 = arith.constant 0 : index
    %59 = vector.load %arg1[%c1_20, %c0_21, %c0_22] : memref<3x8x512xf32, #tpu.memory_space<vmem>>, vector<1x8x384xf32>
    %60 = vector.shape_cast %59 : vector<1x8x384xf32> to vector<8x384xf32>
    %61 = vector.extract_strided_slice %0 {offsets = [0, 9], sizes = [8, 1], strides = [1, 1]} : vector<8x28xf32> to vector<8x1xf32>
    %62 = vector.broadcast %61 : vector<8x1xf32> to vector<8x384xf32>
    %63 = arith.mulf %62, %60 : vector<8x384xf32>
    %64 = arith.addf %58, %63 : vector<8x384xf32>
    %c1_23 = arith.constant 1 : index
    %c0_24 = arith.constant 0 : index
    %c1_25 = arith.constant 1 : index
    %65 = vector.load %arg1[%c1_23, %c0_24, %c1_25] : memref<3x8x512xf32, #tpu.memory_space<vmem>>, vector<1x8x384xf32>
    %66 = vector.shape_cast %65 : vector<1x8x384xf32> to vector<8x384xf32>
    %67 = vector.extract_strided_slice %0 {offsets = [0, 10], sizes = [8, 1], strides = [1, 1]} : vector<8x28xf32> to vector<8x1xf32>
    %68 = vector.broadcast %67 : vector<8x1xf32> to vector<8x384xf32>
    %69 = arith.mulf %68, %66 : vector<8x384xf32>
    %70 = arith.addf %64, %69 : vector<8x384xf32>
    %c1_26 = arith.constant 1 : index
    %c0_27 = arith.constant 0 : index
    %c2_28 = arith.constant 2 : index
    %71 = vector.load %arg1[%c1_26, %c0_27, %c2_28] : memref<3x8x512xf32, #tpu.memory_space<vmem>>, vector<1x8x384xf32>
    %72 = vector.shape_cast %71 : vector<1x8x384xf32> to vector<8x384xf32>
    %73 = vector.extract_strided_slice %0 {offsets = [0, 11], sizes = [8, 1], strides = [1, 1]} : vector<8x28xf32> to vector<8x1xf32>
    %74 = vector.broadcast %73 : vector<8x1xf32> to vector<8x384xf32>
    %75 = arith.mulf %74, %72 : vector<8x384xf32>
    %76 = arith.addf %70, %75 : vector<8x384xf32>
    %c1_29 = arith.constant 1 : index
    %c0_30 = arith.constant 0 : index
    %c18_31 = arith.constant 18 : index
    %77 = vector.load %arg1[%c1_29, %c0_30, %c18_31] : memref<3x8x512xf32, #tpu.memory_space<vmem>>, vector<1x8x384xf32>
    %78 = vector.shape_cast %77 : vector<1x8x384xf32> to vector<8x384xf32>
    %79 = vector.extract_strided_slice %0 {offsets = [0, 12], sizes = [8, 1], strides = [1, 1]} : vector<8x28xf32> to vector<8x1xf32>
    %80 = vector.broadcast %79 : vector<8x1xf32> to vector<8x384xf32>
    %81 = arith.mulf %80, %78 : vector<8x384xf32>
    %82 = arith.addf %76, %81 : vector<8x384xf32>
    %c1_32 = arith.constant 1 : index
    %c0_33 = arith.constant 0 : index
    %c19_34 = arith.constant 19 : index
    %83 = vector.load %arg1[%c1_32, %c0_33, %c19_34] : memref<3x8x512xf32, #tpu.memory_space<vmem>>, vector<1x8x384xf32>
    %84 = vector.shape_cast %83 : vector<1x8x384xf32> to vector<8x384xf32>
    %85 = vector.extract_strided_slice %0 {offsets = [0, 13], sizes = [8, 1], strides = [1, 1]} : vector<8x28xf32> to vector<8x1xf32>
    %86 = vector.broadcast %85 : vector<8x1xf32> to vector<8x384xf32>
    %87 = arith.mulf %86, %84 : vector<8x384xf32>
    %88 = arith.addf %82, %87 : vector<8x384xf32>
    %c1_35 = arith.constant 1 : index
    %c0_36 = arith.constant 0 : index
    %c20_37 = arith.constant 20 : index
    %89 = vector.load %arg1[%c1_35, %c0_36, %c20_37] : memref<3x8x512xf32, #tpu.memory_space<vmem>>, vector<1x8x384xf32>
    %90 = vector.shape_cast %89 : vector<1x8x384xf32> to vector<8x384xf32>
    %91 = vector.extract_strided_slice %0 {offsets = [0, 14], sizes = [8, 1], strides = [1, 1]} : vector<8x28xf32> to vector<8x1xf32>
    %92 = vector.broadcast %91 : vector<8x1xf32> to vector<8x384xf32>
    %93 = arith.mulf %92, %90 : vector<8x384xf32>
    %94 = arith.addf %88, %93 : vector<8x384xf32>
    %c1_38 = arith.constant 1 : index
    %c0_39 = arith.constant 0 : index
    %c36_40 = arith.constant 36 : index
    %95 = vector.load %arg1[%c1_38, %c0_39, %c36_40] : memref<3x8x512xf32, #tpu.memory_space<vmem>>, vector<1x8x384xf32>
    %96 = vector.shape_cast %95 : vector<1x8x384xf32> to vector<8x384xf32>
    %97 = vector.extract_strided_slice %0 {offsets = [0, 15], sizes = [8, 1], strides = [1, 1]} : vector<8x28xf32> to vector<8x1xf32>
    %98 = vector.broadcast %97 : vector<8x1xf32> to vector<8x384xf32>
    %99 = arith.mulf %98, %96 : vector<8x384xf32>
    %100 = arith.addf %94, %99 : vector<8x384xf32>
    %c1_41 = arith.constant 1 : index
    %c0_42 = arith.constant 0 : index
    %c37_43 = arith.constant 37 : index
    %101 = vector.load %arg1[%c1_41, %c0_42, %c37_43] : memref<3x8x512xf32, #tpu.memory_space<vmem>>, vector<1x8x384xf32>
    %102 = vector.shape_cast %101 : vector<1x8x384xf32> to vector<8x384xf32>
    %103 = vector.extract_strided_slice %0 {offsets = [0, 16], sizes = [8, 1], strides = [1, 1]} : vector<8x28xf32> to vector<8x1xf32>
    %104 = vector.broadcast %103 : vector<8x1xf32> to vector<8x384xf32>
    %105 = arith.mulf %104, %102 : vector<8x384xf32>
    %106 = arith.addf %100, %105 : vector<8x384xf32>
    %c1_44 = arith.constant 1 : index
    %c0_45 = arith.constant 0 : index
    %c38_46 = arith.constant 38 : index
    %107 = vector.load %arg1[%c1_44, %c0_45, %c38_46] : memref<3x8x512xf32, #tpu.memory_space<vmem>>, vector<1x8x384xf32>
    %108 = vector.shape_cast %107 : vector<1x8x384xf32> to vector<8x384xf32>
    %109 = vector.extract_strided_slice %0 {offsets = [0, 17], sizes = [8, 1], strides = [1, 1]} : vector<8x28xf32> to vector<8x1xf32>
    %110 = vector.broadcast %109 : vector<8x1xf32> to vector<8x384xf32>
    %111 = arith.mulf %110, %108 : vector<8x384xf32>
    %112 = arith.addf %106, %111 : vector<8x384xf32>
    %cst_47 = arith.constant 0.000000e+00 : f32
    %113 = vector.broadcast %cst_47 : f32 to vector<8x384xf32>
    %c2_48 = arith.constant 2 : index
    %c0_49 = arith.constant 0 : index
    %c0_50 = arith.constant 0 : index
    %114 = vector.load %arg1[%c2_48, %c0_49, %c0_50] : memref<3x8x512xf32, #tpu.memory_space<vmem>>, vector<1x8x384xf32>
    %115 = vector.shape_cast %114 : vector<1x8x384xf32> to vector<8x384xf32>
    %116 = vector.extract_strided_slice %0 {offsets = [0, 18], sizes = [8, 1], strides = [1, 1]} : vector<8x28xf32> to vector<8x1xf32>
    %117 = vector.broadcast %116 : vector<8x1xf32> to vector<8x384xf32>
    %118 = arith.mulf %117, %115 : vector<8x384xf32>
    %119 = arith.addf %113, %118 : vector<8x384xf32>
    %c2_51 = arith.constant 2 : index
    %c0_52 = arith.constant 0 : index
    %c1_53 = arith.constant 1 : index
    %120 = vector.load %arg1[%c2_51, %c0_52, %c1_53] : memref<3x8x512xf32, #tpu.memory_space<vmem>>, vector<1x8x384xf32>
    %121 = vector.shape_cast %120 : vector<1x8x384xf32> to vector<8x384xf32>
    %122 = vector.extract_strided_slice %0 {offsets = [0, 19], sizes = [8, 1], strides = [1, 1]} : vector<8x28xf32> to vector<8x1xf32>
    %123 = vector.broadcast %122 : vector<8x1xf32> to vector<8x384xf32>
    %124 = arith.mulf %123, %121 : vector<8x384xf32>
    %125 = arith.addf %119, %124 : vector<8x384xf32>
    %c2_54 = arith.constant 2 : index
    %c0_55 = arith.constant 0 : index
    %c2_56 = arith.constant 2 : index
    %126 = vector.load %arg1[%c2_54, %c0_55, %c2_56] : memref<3x8x512xf32, #tpu.memory_space<vmem>>, vector<1x8x384xf32>
    %127 = vector.shape_cast %126 : vector<1x8x384xf32> to vector<8x384xf32>
    %128 = vector.extract_strided_slice %0 {offsets = [0, 20], sizes = [8, 1], strides = [1, 1]} : vector<8x28xf32> to vector<8x1xf32>
    %129 = vector.broadcast %128 : vector<8x1xf32> to vector<8x384xf32>
    %130 = arith.mulf %129, %127 : vector<8x384xf32>
    %131 = arith.addf %125, %130 : vector<8x384xf32>
    %c2_57 = arith.constant 2 : index
    %c0_58 = arith.constant 0 : index
    %c18_59 = arith.constant 18 : index
    %132 = vector.load %arg1[%c2_57, %c0_58, %c18_59] : memref<3x8x512xf32, #tpu.memory_space<vmem>>, vector<1x8x384xf32>
    %133 = vector.shape_cast %132 : vector<1x8x384xf32> to vector<8x384xf32>
    %134 = vector.extract_strided_slice %0 {offsets = [0, 21], sizes = [8, 1], strides = [1, 1]} : vector<8x28xf32> to vector<8x1xf32>
    %135 = vector.broadcast %134 : vector<8x1xf32> to vector<8x384xf32>
    %136 = arith.mulf %135, %133 : vector<8x384xf32>
    %137 = arith.addf %131, %136 : vector<8x384xf32>
    %c2_60 = arith.constant 2 : index
    %c0_61 = arith.constant 0 : index
    %c19_62 = arith.constant 19 : index
    %138 = vector.load %arg1[%c2_60, %c0_61, %c19_62] : memref<3x8x512xf32, #tpu.memory_space<vmem>>, vector<1x8x384xf32>
    %139 = vector.shape_cast %138 : vector<1x8x384xf32> to vector<8x384xf32>
    %140 = vector.extract_strided_slice %0 {offsets = [0, 22], sizes = [8, 1], strides = [1, 1]} : vector<8x28xf32> to vector<8x1xf32>
    %141 = vector.broadcast %140 : vector<8x1xf32> to vector<8x384xf32>
    %142 = arith.mulf %141, %139 : vector<8x384xf32>
    %143 = arith.addf %137, %142 : vector<8x384xf32>
    %c2_63 = arith.constant 2 : index
    %c0_64 = arith.constant 0 : index
    %c20_65 = arith.constant 20 : index
    %144 = vector.load %arg1[%c2_63, %c0_64, %c20_65] : memref<3x8x512xf32, #tpu.memory_space<vmem>>, vector<1x8x384xf32>
    %145 = vector.shape_cast %144 : vector<1x8x384xf32> to vector<8x384xf32>
    %146 = vector.extract_strided_slice %0 {offsets = [0, 23], sizes = [8, 1], strides = [1, 1]} : vector<8x28xf32> to vector<8x1xf32>
    %147 = vector.broadcast %146 : vector<8x1xf32> to vector<8x384xf32>
    %148 = arith.mulf %147, %145 : vector<8x384xf32>
    %149 = arith.addf %143, %148 : vector<8x384xf32>
    %c2_66 = arith.constant 2 : index
    %c0_67 = arith.constant 0 : index
    %c36_68 = arith.constant 36 : index
    %150 = vector.load %arg1[%c2_66, %c0_67, %c36_68] : memref<3x8x512xf32, #tpu.memory_space<vmem>>, vector<1x8x384xf32>
    %151 = vector.shape_cast %150 : vector<1x8x384xf32> to vector<8x384xf32>
    %152 = vector.extract_strided_slice %0 {offsets = [0, 24], sizes = [8, 1], strides = [1, 1]} : vector<8x28xf32> to vector<8x1xf32>
    %153 = vector.broadcast %152 : vector<8x1xf32> to vector<8x384xf32>
    %154 = arith.mulf %153, %151 : vector<8x384xf32>
    %155 = arith.addf %149, %154 : vector<8x384xf32>
    %c2_69 = arith.constant 2 : index
    %c0_70 = arith.constant 0 : index
    %c37_71 = arith.constant 37 : index
    %156 = vector.load %arg1[%c2_69, %c0_70, %c37_71] : memref<3x8x512xf32, #tpu.memory_space<vmem>>, vector<1x8x384xf32>
    %157 = vector.shape_cast %156 : vector<1x8x384xf32> to vector<8x384xf32>
    %158 = vector.extract_strided_slice %0 {offsets = [0, 25], sizes = [8, 1], strides = [1, 1]} : vector<8x28xf32> to vector<8x1xf32>
    %159 = vector.broadcast %158 : vector<8x1xf32> to vector<8x384xf32>
    %160 = arith.mulf %159, %157 : vector<8x384xf32>
    %161 = arith.addf %155, %160 : vector<8x384xf32>
    %c2_72 = arith.constant 2 : index
    %c0_73 = arith.constant 0 : index
    %c38_74 = arith.constant 38 : index
    %162 = vector.load %arg1[%c2_72, %c0_73, %c38_74] : memref<3x8x512xf32, #tpu.memory_space<vmem>>, vector<1x8x384xf32>
    %163 = vector.shape_cast %162 : vector<1x8x384xf32> to vector<8x384xf32>
    %164 = vector.extract_strided_slice %0 {offsets = [0, 26], sizes = [8, 1], strides = [1, 1]} : vector<8x28xf32> to vector<8x1xf32>
    %165 = vector.broadcast %164 : vector<8x1xf32> to vector<8x384xf32>
    %166 = arith.mulf %165, %163 : vector<8x384xf32>
    %167 = arith.addf %161, %166 : vector<8x384xf32>
    %168 = arith.addf %57, %112 : vector<8x384xf32>
    %169 = arith.addf %168, %167 : vector<8x384xf32>
    %c0_75 = arith.constant 0 : index
    %c0_76 = arith.constant 0 : index
    %170 = vector.load %arg3[%c0_75, %c0_76] : memref<8x384xf32, #tpu.memory_space<vmem>>, vector<8x384xf32>
    tpu.vector_store %arg3[%c0_75, %c0_76], %169 {strides = array<i32>} : memref<8x384xf32, #tpu.memory_space<vmem>>, vector<8x384xf32>,
    return
  }
  func.func @transform_0(%arg0: i32) -> (i32, i32, i32) {
    %c0_i32 = arith.constant 0 : i32
    %c0_i32_0 = arith.constant 0 : i32
    %c0_i32_1 = arith.constant 0 : i32
    %c0_i32_2 = arith.constant 0 : i32
    return %c0_i32, %c0_i32_0, %c0_i32_1 : i32, i32, i32
  }
  func.func @transform_1(%arg0: i32) -> (i32, i32) {
    %c0_i32 = arith.constant 0 : i32
    %c0_i32_0 = arith.constant 0 : i32
    %c0_i32_1 = arith.constant 0 : i32
    return %c0_i32, %c0_i32_0 : i32, i32
  }
  func.func @transform_2(%arg0: i32) -> (i32, i32) {
    %c0_i32 = arith.constant 0 : i32
    %c0_i32_0 = arith.constant 0 : i32
    %c0_i32_1 = arith.constant 0 : i32
    return %c0_i32, %c0_i32_0 : i32, i32
  }
}

</mosaic_0001>

<bundles_post_ra>
// kernel: tile.9
= control target key start
LH: loop header
LB: loop body
LE: loop exit
PB: predicated region body
PF: predicated region fallthrough
CT: control target
= control target key end

     0   :  { %vm11_vm0 = vcmask 228352   ;;  %s42_s0 = inlined_call_operand.vmem [shape: f32[2,3,28], index: 0, kind: input, shape index: {}]   ;;  %s43_s1 = inlined_call_operand.vmem [shape: f32[6,28], index: 1, kind: output, shape index: {}]  }
   0x1   :  { %v18_v0 = vld [vmem:[%s42_s0 + $0x4] sm:$0xf]  ;;  %v8_v1 = vld [vmem:[%s42_s0] sm:$0xf] }
   0x2   :  { %7 = vst [vmem:[#allocation0 + $0x8] sm:$0xf] %v18_v0  ;;  %9 = vst [vmem:[#allocation0] sm:$0xf] %v8_v1 }
   0x9   :  { %v10_v2 = vld [vmem:[#allocation0] sm:$0x7]   ;;  %v14_v3 = vld [vmem:[#allocation0 + $0x8] sm:$0x7]  }
   0xa   :  { %12 = vst.msk [vmem:[%s43_s1] sm:$0x7] %vm11_vm0, %v10_v2   ;;  %19 = vst.msk [vmem:[%s43_s1 + $0x3] sm:$0x7] %vm11_vm0, %v14_v3  }

// kernel: conv2d_same_pallas.1
= control target key start
LH: loop header
LB: loop body
LE: loop exit
PB: predicated region body
PF: predicated region fallthrough
CT: control target
= control target key end

     0   :  { %v866_v0 = vmov 1   ;;  %v867_v1 = vmov 27   ;;  %v868_v3 = vmov 0   ;;  %v869_v4 = vmov 10   ;;  %s881_s16 = smov 127   ;;  %s882_s19 = smov 126   ;;  %s1351_s1 = inlined_call_operand.vmem [shape: f32[8,28], index: 1, kind: input, shape index: {}]   ;;  %s1352_s0 = inlined_call_operand.vmem [shape: f32[3,8,512], index: 0, kind: input, shape index: {}]   ;;  %s1353_s2 = inlined_call_operand.vmem [shape: f32[8,384], index: 2, kind: output, shape index: {}]  }
   0x1   :  { %839 = vset.pattern.permute.xlu1 %v866_v0  ;;  %837 = vset.pattern.permute.xlu0 %v867_v1  ;;  %v920_v2 = vld [vmem:[%s1351_s1] sm:$0xff]  ;;  %v870_v5 = vmov 2   ;;  %v871_v6 = vmov 11   ;;  %v872_v7 = vmov 3   ;;  %v873_v8 = vmov 4   ;;  %v944_v17 = vld [vmem:[%s1352_s0 + $0x10] sm:$0xff] }
   0x2   :  { %35 = vperm.xlu1 %839, %v920_v2   ;;  %14 = vperm.xlu0 %837, %v920_v2   ;;  %v874_v9 = vmov 5   ;;  %v875_v10 = vmov 6   ;;  %v876_v11 = vmov 7   ;;  %v877_v12 = vmov 8   ;;  %v939_v16 = vld [vmem:[%s1352_s0] sm:$0xff]  ;;  %v951_v20 = vld [vmem:[%s1352_s0 + $0x8] sm:$0xff] }
   0x3   :  { %v878_v13 = vmov 9   ;;  %v879_v14 = vmov 12   ;;  %v880_v15 = vmov 13   ;;  %v961_v24 = vld [vmem:[%s1352_s0 + $0x18] sm:$0xff]  ;;  %s883_s20 = smov 110   ;;  %s884_s21 = smov 109  }
   0x4   :  { %s885_s22 = smov 108   ;;  %s886_s23 = smov 92   ;;  %v997_v48 = vld [vmem:[%s1352_s0 + $0x28] sm:$0xff]  ;;  %v1008_v53 = vld [vmem:[%s1352_s0 + $0x38] sm:$0xff]  ;;  %v1019_v58 = vld [vmem:[%s1352_s0 + $0x20] sm:$0xff]  ;;  %vm54_vm0 = vcmask 1039360  }
   0x5   :  { %s887_s24 = smov 91   ;;  %s888_s27 = smov 90   ;;  %v1030_v61 = vld [vmem:[%s1352_s0 + $0x30] sm:$0xff]  ;;  %vm84_vm1 = vcmask 1031168   ;;  %vm114_vm2 = vcmask 900096   ;;  %vm144_vm3 = vcmask 891904  }
   0x6   :  { %838 = vset.pattern.permute.xlu0 %v868_v3  ;;  %848 = vset.pattern.permute.xlu1 %v869_v4  ;;  %vm174_vm4 = vcmask 883712   ;;  %vm204_vm5 = vcmask 752640   ;;  %vm234_vm6 = vcmask 744448   ;;  %vm264_vm7 = vcmask 736256  }
   0x7   :  { %21 = vperm.xlu0 %838, %v920_v2   ;;  %293 = vperm.xlu1 %848, %v920_v2  }
   0xb   :  { %840 = vset.pattern.permute.xlu0 %v870_v5  ;;  %849 = vset.pattern.permute.xlu1 %v871_v6  ;;  %v889_v6 = vmov 14  }
   0xc   :  { %65 = vperm.xlu0 %840, %v920_v2   ;;  %322 = vperm.xlu1 %849, %v920_v2  }
  0x10   :  { %841 = vset.pattern.permute.xlu0 %v872_v7 }
  0x11   :  { %95 = vperm.xlu0 %841, %v920_v2  }
  0x15   :  { %842 = vset.pattern.permute.xlu0 %v873_v8 }
  0x16   :  { %125 = vperm.xlu0 %842, %v920_v2  }
  0x1a   :  { %843 = vset.pattern.permute.xlu0 %v874_v9  ;;  %v890_v9 = vmov 19  }
  0x1b   :  { %155 = vperm.xlu0 %843, %v920_v2   ;;  %853 = vset.pattern.permute.xlu1 %v890_v9 }
  0x1f   :  { %844 = vset.pattern.permute.xlu0 %v875_v10 }
  0x20   :  { %185 = vperm.xlu0 %844, %v920_v2  }
  0x24   :  { %845 = vset.pattern.permute.xlu0 %v876_v11 }
  0x25   :  { %215 = vperm.xlu0 %845, %v920_v2  }
  0x29   :  { %846 = vset.pattern.permute.xlu0 %v877_v12 }
  0x2a   :  { %245 = vperm.xlu0 %846, %v920_v2  }
  0x2e   :  { %847 = vset.pattern.permute.xlu0 %v878_v13 }
  0x2f   :  { %279 = vperm.xlu0 %847, %v920_v2  }
  0x33   :  { %850 = vset.pattern.permute.xlu0 %v879_v14 }
  0x34   :  { %351 = vperm.xlu0 %850, %v920_v2  }
  0x38   :  { %851 = vset.pattern.permute.xlu0 %v880_v15 }
  0x81   :  { %v36_v18 = vpop.permute.xlu1 %35  ;;  %v946_v19 = vpop.permute.xlu0 %14 }
  0x82   :  { %v38_v21 = vmul.f32 %v36_v18, %v939_v16  ;;  %v40_v22 = vmul.f32 %v36_v18, %v944_v17  ;;  %v39_v23 = vmul.f32 %v36_v18, %v951_v20  ;;  %v41_v26 = vmul.f32 %v36_v18, %v961_v24 }
  0x84   :  { %46 = vrot.lane.b32.xlu1 %v38_v21, %s881_s16  ;;  %50 = vrot.lane.b32.xlu0 %v40_v22, %s881_s16 }
  0x86   :  { %v963_v25 = vpop.permute.xlu0 %21  ;;  %v294_v47 = vpop.permute.xlu1 %293 }
  0x87   :  { %v297_v51 = vmul.f32 %v997_v48, %v294_v47  ;;  %v299_v55 = vmul.f32 %v1008_v53, %v294_v47  ;;  %v296_v14 = vmul.f32 %v1019_v58, %v294_v47  ;;  %v298_v15 = vmul.f32 %v1030_v61, %v294_v47 }
  0x88   :  { %48 = vrot.lane.b32.xlu1 %v39_v23, %s881_s16  ;;  %v25_v23 = vmul.f32 %v963_v25, %v951_v20 }
  0x8b   :  { %v66_v27 = vpop.permute.xlu0 %65  ;;  %v323_v54 = vpop.permute.xlu1 %322 }
  0x8c   :  { %52 = vrot.lane.b32.xlu1 %v41_v26, %s881_s16  ;;  %v70_v28 = vmul.f32 %v66_v27, %v944_v17  ;;  %v68_v29 = vmul.f32 %v66_v27, %v939_v16  ;;  %v69_v32 = vmul.f32 %v66_v27, %v951_v20  ;;  %v71_v35 = vmul.f32 %v66_v27, %v961_v24 }
  0x8d   :  { %v325_v59 = vmul.f32 %v1019_v58, %v323_v54  ;;  %v327_v63 = vmul.f32 %v1030_v61, %v323_v54  ;;  %v326_v18 = vmul.f32 %v997_v48, %v323_v54  ;;  %v328_v21 = vmul.f32 %v1008_v53, %v323_v54 }
  0x8e   :  { %80 = vrot.lane.b32.xlu0 %v70_v28, %s882_s19  ;;  %v26_v28 = vmul.f32 %v963_v25, %v944_v17 }
  0x90   :  { %v96_v30 = vpop.permute.xlu0 %95  ;;  %76 = vrot.lane.b32.xlu1 %v68_v29, %s882_s19 }
  0x91   :  { %v100_v31 = vmul.f32 %v96_v30, %v944_v17  ;;  %v98_v37 = vmul.f32 %v96_v30, %v939_v16  ;;  %v99_v39 = vmul.f32 %v96_v30, %v951_v20  ;;  %v101_v42 = vmul.f32 %v96_v30, %v961_v24 }
  0x92   :  { %v28_v30 = vadd.f32 %v25_v23, %v946_v19 }
  0x93   :  { %110 = vrot.lane.b32.xlu0 %v100_v31, %s883_s20 }
  0x94   :  { %78 = vrot.lane.b32.xlu1 %v69_v32, %s882_s19 }
  0x95   :  { %v126_v33 = vpop.permute.xlu0 %125 }
  0x96   :  { %v130_v34 = vmul.f32 %v126_v33, %v944_v17  ;;  %v128_v45 = vmul.f32 %v126_v33, %v939_v16  ;;  %v129_v50 = vmul.f32 %v126_v33, %v951_v20  ;;  %v131_v52 = vmul.f32 %v126_v33, %v961_v24 }
  0x98   :  { %140 = vrot.lane.b32.xlu0 %v130_v34, %s884_s21  ;;  %82 = vrot.lane.b32.xlu1 %v71_v35, %s882_s19  ;;  %v29_v34 = vadd.f32 %v26_v28, %v946_v19 }
  0x9a   :  { %v156_v36 = vpop.permute.xlu0 %155 }
  0x9b   :  { %v160_v38 = vmul.f32 %v156_v36, %v944_v17  ;;  %v158_v56 = vmul.f32 %v156_v36, %v939_v16  ;;  %v159_v60 = vmul.f32 %v156_v36, %v951_v20  ;;  %v161_v0 = vmul.f32 %v156_v36, %v961_v24 }
  0x9c   :  { %106 = vrot.lane.b32.xlu1 %v98_v37, %s883_s20 }
  0x9d   :  { %170 = vrot.lane.b32.xlu0 %v160_v38, %s885_s22 }
  0x9f   :  { %v186_v40 = vpop.permute.xlu0 %185 }
  0xa0   :  { %108 = vrot.lane.b32.xlu1 %v99_v39, %s883_s20  ;;  %v190_v41 = vmul.f32 %v186_v40, %v944_v17  ;;  %v188_v3 = vmul.f32 %v186_v40, %v939_v16  ;;  %v189_v4 = vmul.f32 %v186_v40, %v951_v20  ;;  %v191_v5 = vmul.f32 %v186_v40, %v961_v24 }
  0xa2   :  { %200 = vrot.lane.b32.xlu0 %v190_v41, %s886_s23 }
  0xa4   :  { %v216_v43 = vpop.permute.xlu0 %215  ;;  %112 = vrot.lane.b32.xlu1 %v101_v42, %s883_s20 }
  0xa5   :  { %v220_v44 = vmul.f32 %v216_v43, %v944_v17  ;;  %v218_v7 = vmul.f32 %v216_v43, %v939_v16  ;;  %v219_v8 = vmul.f32 %v216_v43, %v951_v20  ;;  %v221_v10 = vmul.f32 %v216_v43, %v961_v24 }
  0xa7   :  { %230 = vrot.lane.b32.xlu0 %v220_v44, %s887_s24 }
  0xa8   :  { %136 = vrot.lane.b32.xlu1 %v128_v45, %s884_s21 }
  0xa9   :  { %v246_v46 = vpop.permute.xlu0 %245 }
  0xaa   :  { %v250_v49 = vmul.f32 %v246_v46, %v944_v17  ;;  %v248_v11 = vmul.f32 %v246_v46, %v939_v16  ;;  %v249_v12 = vmul.f32 %v246_v46, %v951_v20  ;;  %v251_v13 = vmul.f32 %v246_v46, %v961_v24 }
  0xac   :  { %260 = vrot.lane.b32.xlu0 %v250_v49, %s888_s27  ;;  %138 = vrot.lane.b32.xlu1 %v129_v50, %s884_s21 }
  0xae   :  { %v1014_v57 = vpop.permute.xlu0 %279 }
  0xb0   :  { %306 = vrot.lane.b32.xlu0 %v297_v51, %s881_s16  ;;  %142 = vrot.lane.b32.xlu1 %v131_v52, %s884_s21 }
  0xb3   :  { %v352_v62 = vpop.permute.xlu0 %351 }
  0xb4   :  { %310 = vrot.lane.b32.xlu0 %v299_v55, %s881_s16  ;;  %166 = vrot.lane.b32.xlu1 %v158_v56, %s885_s22  ;;  %v356_v1 = vmul.f32 %v1030_v61, %v352_v62  ;;  %v354_v22 = vmul.f32 %v1019_v58, %v352_v62  ;;  %v355_v26 = vmul.f32 %v997_v48, %v352_v62 }
  0xb5   :  { %v357_v31 = vmul.f32 %v1008_v53, %v352_v62 }
  0xb8   :  { %333 = vrot.lane.b32.xlu0 %v325_v59, %s882_s19  ;;  %168 = vrot.lane.b32.xlu1 %v159_v60, %s885_s22 }
  0xbc   :  { %337 = vrot.lane.b32.xlu0 %v327_v63, %s882_s19  ;;  %172 = vrot.lane.b32.xlu1 %v161_v0, %s885_s22 }
  0xc0   :  { %366 = vrot.lane.b32.xlu0 %v356_v1, %s883_s20  ;;  %196 = vrot.lane.b32.xlu1 %v188_v3, %s886_s23 }
  0xc4   :  { %380 = vperm.xlu0 %851, %v920_v2   ;;  %198 = vrot.lane.b32.xlu1 %v189_v4, %s886_s23 }
  0xc8   :  { %202 = vrot.lane.b32.xlu1 %v191_v5, %s886_s23  ;;  %852 = vset.pattern.permute.xlu0 %v889_v6 }
  0xcc   :  { %226 = vrot.lane.b32.xlu1 %v218_v7, %s887_s24 }
  0xd0   :  { %228 = vrot.lane.b32.xlu1 %v219_v8, %s887_s24 }
  0xd4   :  { %232 = vrot.lane.b32.xlu1 %v221_v10, %s887_s24 }
  0xd8   :  { %256 = vrot.lane.b32.xlu1 %v248_v11, %s888_s27 }
  0xdc   :  { %258 = vrot.lane.b32.xlu1 %v249_v12, %s888_s27 }
  0xe0   :  { %262 = vrot.lane.b32.xlu1 %v251_v13, %s888_s27 }
  0xe4   :  { %304 = vrot.lane.b32.xlu1 %v296_v14, %s881_s16 }
  0xe8   :  { %308 = vrot.lane.b32.xlu1 %v298_v15, %s881_s16  ;;  %v24_v15 = vmul.f32 %v939_v16, %v963_v25 }
  0xea   :  { %v27_v23 = vadd.f32 %v24_v15, %v946_v19  ;;  %v284_v15 = vmul.f32 %v1030_v61, %v1014_v57 }
  0xec   :  { %335 = vrot.lane.b32.xlu1 %v326_v18, %s882_s19 }
  0xf0   :  { %339 = vrot.lane.b32.xlu1 %v328_v21, %s882_s19 }
  0xf4   :  { %362 = vrot.lane.b32.xlu1 %v354_v22, %s883_s20 }
  0xf6   :  { %v47_v24 = vpop.permute.xlu1 %46  ;;  %v51_v27 = vpop.permute.xlu0 %50 }
  0xf8   :  { %364 = vrot.lane.b32.xlu1 %v355_v26, %s883_s20 }
  0xfa   :  { %v49_v29 = vpop.permute.xlu1 %48 }
  0xfb   :  { %v56_v32 = vsel %vm54_vm0, %v49_v29, %v51_v27  ;;  %v55_v22 = vsel %vm54_vm0, %v47_v24, %v49_v29 }
  0xfc   :  { %v62_v33 = vadd.f32 %v56_v32, %v28_v30  ;;  %368 = vrot.lane.b32.xlu1 %v357_v31, %s883_s20  ;;  %v61_v30 = vadd.f32 %v55_v22, %v27_v23 }
  0xfe   :  { %v53_v20 = vpop.permute.xlu1 %52 }
  0xff   :  { %v57_v35 = vsel %vm54_vm0, %v51_v27, %v53_v20 }
 0x100   :  { %v63_v36 = vadd.f32 %v57_v35, %v29_v34  ;;  %v81_v37 = vpop.permute.xlu0 %80 }
 0x102   :  { %v77_v38 = vpop.permute.xlu1 %76 }
 0x105   :  { %v111_v17 = vpop.permute.xlu0 %110 }
 0x106   :  { %v79_v39 = vpop.permute.xlu1 %78 }
 0x107   :  { %v86_v40 = vsel %vm84_vm1, %v79_v39, %v81_v37  ;;  %v85_v27 = vsel %vm84_vm1, %v77_v38, %v79_v39 }
 0x108   :  { %v92_v41 = vadd.f32 %v86_v40, %v62_v33  ;;  %v91_v16 = vadd.f32 %v85_v27, %v61_v30 }
 0x10a   :  { %v141_v42 = vpop.permute.xlu0 %140  ;;  %v83_v43 = vpop.permute.xlu1 %82 }
 0x10b   :  { %v87_v44 = vsel %vm84_vm1, %v81_v37, %v83_v43 }
 0x10c   :  { %v93_v45 = vadd.f32 %v87_v44, %v63_v36 }
 0x10e   :  { %v107_v46 = vpop.permute.xlu1 %106 }
 0x10f   :  { %v171_v47 = vpop.permute.xlu0 %170 }
 0x112   :  { %v109_v49 = vpop.permute.xlu1 %108 }
 0x113   :  { %v116_v50 = vsel %vm114_vm2, %v109_v49, %v111_v17  ;;  %v115_v32 = vsel %vm114_vm2, %v107_v46, %v109_v49 }
 0x114   :  { %v122_v51 = vadd.f32 %v116_v50, %v92_v41  ;;  %v201_v52 = vpop.permute.xlu0 %200  ;;  %v121_v24 = vadd.f32 %v115_v32, %v91_v16 }
 0x116   :  { %v113_v54 = vpop.permute.xlu1 %112 }
 0x117   :  { %v117_v55 = vsel %vm114_vm2, %v111_v17, %v113_v54 }
 0x118   :  { %v123_v56 = vadd.f32 %v117_v55, %v93_v45 }
 0x119   :  { %v231_v60 = vpop.permute.xlu0 %230 }
 0x11a   :  { %v137_v59 = vpop.permute.xlu1 %136 }
 0x11e   :  { %v139_v62 = vpop.permute.xlu1 %138  ;;  %v1084_v1 = vpop.permute.xlu0 %260 }
 0x11f   :  { %v146_v63 = vsel %vm144_vm3, %v139_v62, %v141_v42  ;;  %v145_v20 = vsel %vm144_vm3, %v137_v59, %v139_v62  ;;  %v891_v59 = vmov 21  }
 0x120   :  { %v152_v0 = vadd.f32 %v146_v63, %v122_v51  ;;  %v151_v35 = vadd.f32 %v145_v20, %v121_v24 }
 0x122   :  { %v143_v3 = vpop.permute.xlu1 %142  ;;  %v1087_v7 = vpop.permute.xlu0 %306 }
 0x123   :  { %v147_v4 = vsel %vm144_vm3, %v141_v42, %v143_v3 }
 0x124   :  { %v153_v5 = vadd.f32 %v147_v4, %v123_v56 }
 0x126   :  { %v167_v6 = vpop.permute.xlu1 %166  ;;  %v1090_v11 = vpop.permute.xlu0 %310 }
 0x12a   :  { %v169_v8 = vpop.permute.xlu1 %168  ;;  %v1095_v21 = vpop.permute.xlu0 %333 }
 0x12b   :  { %v176_v9 = vsel %vm174_vm4, %v169_v8, %v171_v47  ;;  %v175_v19 = vsel %vm174_vm4, %v167_v6, %v169_v8  ;;  %v282_v8 = vmul.f32 %v1019_v58, %v1014_v57 }
 0x12c   :  { %v182_v10 = vadd.f32 %v176_v9, %v152_v0  ;;  %v181_v17 = vadd.f32 %v175_v19, %v151_v35  ;;  %v893_v9 = vmov 20   ;;  %v899_v19 = vmov 24  }
 0x12e   :  { %v173_v12 = vpop.permute.xlu1 %172  ;;  %v1102_v33 = vpop.permute.xlu0 %337 }
 0x12f   :  { %v177_v13 = vsel %vm174_vm4, %v171_v47, %v173_v12 }
 0x130   :  { %v183_v14 = vadd.f32 %v177_v13, %v153_v5  ;;  %v892_v5 = vmov 23  }
 0x132   :  { %v197_v18 = vpop.permute.xlu1 %196  ;;  %v1107_v37 = vpop.permute.xlu0 %366 }
 0x136   :  { %v199_v26 = vpop.permute.xlu1 %198 }
 0x137   :  { %v206_v28 = vsel %vm204_vm5, %v199_v26, %v201_v52  ;;  %v205_v38 = vsel %vm204_vm5, %v197_v18, %v199_v26  ;;  %v895_v26 = vmov 22  }
 0x138   :  { %v212_v31 = vadd.f32 %v206_v28, %v182_v10  ;;  %v211_v39 = vadd.f32 %v205_v38, %v181_v17 }
 0x13a   :  { %v203_v25 = vpop.permute.xlu1 %202 }
 0x13b   :  { %v207_v34 = vsel %vm204_vm5, %v201_v52, %v203_v25  ;;  %v896_v25 = vmov 15  }
 0x13c   :  { %v213_v29 = vadd.f32 %v207_v34, %v183_v14  ;;  %v894_v14 = vmov 17   ;;  %v897_v34 = vmov 16  }
 0x13e   :  { %v227_v36 = vpop.permute.xlu1 %226 }
 0x142   :  { %v229_v40 = vpop.permute.xlu1 %228 }
 0x143   :  { %v235_v41 = vsel %vm234_vm6, %v227_v36, %v229_v40  ;;  %v236_v42 = vsel %vm234_vm6, %v229_v40, %v231_v60  ;;  %v381_v43 = vpop.permute.xlu0 %380  ;;  %v900_v40 = vmov 25  }
 0x144   :  { %v241_v44 = vadd.f32 %v235_v41, %v211_v39  ;;  %v242_v45 = vadd.f32 %v236_v42, %v212_v31  ;;  %v385_v46 = vmul.f32 %v1030_v61, %v381_v43  ;;  %v383_v47 = vmul.f32 %v1019_v58, %v381_v43 }
 0x145   :  { %v384_v52 = vmul.f32 %v997_v48, %v381_v43  ;;  %v386_v55 = vmul.f32 %v1008_v53, %v381_v43  ;;  %v901_v42 = vmov 26  }
 0x146   :  { %395 = vrot.lane.b32.xlu0 %v385_v46, %s884_s21  ;;  %391 = vrot.lane.b32.xlu1 %v383_v47, %s884_s21  ;;  %v233_v49 = vpop.permute.xlu1 %232 }
 0x147   :  { %v237_v50 = vsel %vm234_vm6, %v231_v60, %v233_v49 }
 0x148   :  { %v243_v51 = vadd.f32 %v237_v50, %v213_v29 }
 0x14a   :  { %409 = vperm.xlu0 %852, %v920_v2   ;;  %393 = vrot.lane.b32.xlu1 %v384_v52, %s884_s21  ;;  %v257_v54 = vpop.permute.xlu1 %256 }
 0x14e   :  { %397 = vrot.lane.b32.xlu1 %v386_v55, %s884_s21  ;;  %v259_v56 = vpop.permute.xlu1 %258  ;;  %855 = vset.pattern.permute.xlu0 %v891_v59 }
 0x14f   :  { %v265_v62 = vsel %vm264_vm7, %v257_v54, %v259_v56  ;;  %v266_v60 = vsel %vm264_vm7, %v259_v56, %v1084_v1  ;;  %601 = vperm.xlu0 %855, %v920_v2  }
 0x150   :  { %v1126_v63 = vadd.f32 %v265_v62, %v241_v44  ;;  %v1128_v0 = vadd.f32 %v266_v60, %v242_v45 }
 0x152   :  { %543 = vperm.xlu1 %853, %v920_v2   ;;  %v263_v3 = vpop.permute.xlu1 %262 }
 0x153   :  { %v267_v4 = vsel %vm264_vm7, %v1084_v1, %v263_v3  ;;  %858 = vset.pattern.permute.xlu0 %v892_v5  ;;  %v283_v1 = vmul.f32 %v997_v48, %v1014_v57 }
 0x154   :  { %v1133_v6 = vadd.f32 %v267_v4, %v243_v51  ;;  %659 = vperm.xlu0 %858, %v920_v2  }
 0x156   :  { %854 = vset.pattern.permute.xlu1 %v893_v9  ;;  %v305_v10 = vpop.permute.xlu1 %304 }
 0x157   :  { %v312_v12 = vsel %vm54_vm0, %v305_v10, %v1087_v7  ;;  %572 = vperm.xlu1 %854, %v920_v2  }
 0x158   :  { %v318_v13 = vadd.f32 %v312_v12, %v282_v8  ;;  %861 = vset.pattern.permute.xlu0 %v894_v14 }
 0x159   :  { %496 = vperm.xlu0 %861, %v920_v2  }
 0x15a   :  { %v309_v18 = vpop.permute.xlu1 %308 }
 0x15b   :  { %v313_v22 = vsel %vm54_vm0, %v1087_v7, %v309_v18  ;;  %v314_v23 = vsel %vm54_vm0, %v309_v18, %v1090_v11  ;;  %856 = vset.pattern.permute.xlu1 %v895_v26 }
 0x15c   :  { %v319_v27 = vadd.f32 %v313_v22, %v283_v1  ;;  %v320_v28 = vadd.f32 %v314_v23, %v284_v15  ;;  %630 = vperm.xlu1 %856, %v920_v2   ;;  %v1196_v1 = vld [vmem:[%s1352_s0 + $0x40] sm:$0xff]  ;;  %v1205_v22 = vld [vmem:[%s1352_s0 + $0x48] sm:$0xff]  ;;  %v1210_v23 = vld [vmem:[%s1352_s0 + $0x50] sm:$0xff] }
 0x15e   :  { %v336_v30 = vpop.permute.xlu1 %335 }
 0x15f   :  { %v341_v31 = vsel %vm84_vm1, %v1095_v21, %v336_v30  ;;  %v342_v57 = vsel %vm84_vm1, %v336_v30, %v1102_v33  ;;  %v898_v21 = vmov 18  }
 0x160   :  { %v347_v32 = vadd.f32 %v341_v31, %v318_v13  ;;  %v348_v16 = vadd.f32 %v342_v57, %v319_v27  ;;  %857 = vset.pattern.permute.xlu1 %v896_v25  ;;  %864 = vset.pattern.permute.xlu0 %v898_v21  ;;  %v1219_v27 = vld [vmem:[%s1352_s0 + $0x58] sm:$0xff] }
 0x161   :  { %438 = vperm.xlu1 %857, %v920_v2  }
 0x162   :  { %v340_v7 = vpop.permute.xlu1 %339 }
 0x163   :  { %v343_v11 = vsel %vm84_vm1, %v1102_v33, %v340_v7 }
 0x164   :  { %v349_v20 = vadd.f32 %v343_v11, %v320_v28 }
 0x165   :  { %859 = vset.pattern.permute.xlu1 %v897_v34 }
 0x166   :  { %v363_v24 = vpop.permute.xlu1 %362  ;;  %467 = vperm.xlu1 %859, %v920_v2  }
 0x16a   :  { %v365_v29 = vpop.permute.xlu1 %364  ;;  %860 = vset.pattern.permute.xlu1 %v899_v19 }
 0x16b   :  { %v370_v35 = vsel %vm114_vm2, %v363_v24, %v365_v29  ;;  %v371_v36 = vsel %vm114_vm2, %v365_v29, %v1107_v37  ;;  %688 = vperm.xlu1 %860, %v920_v2  }
 0x16c   :  { %v376_v38 = vadd.f32 %v370_v35, %v347_v32  ;;  %v377_v33 = vadd.f32 %v371_v36, %v348_v16 }
 0x16e   :  { %v369_v17 = vpop.permute.xlu1 %368 }
 0x16f   :  { %v372_v39 = vsel %vm114_vm2, %v1107_v37, %v369_v17  ;;  %862 = vset.pattern.permute.xlu1 %v900_v40 }
 0x170   :  { %v378_v41 = vadd.f32 %v372_v39, %v349_v20  ;;  %717 = vperm.xlu1 %862, %v920_v2  }
 0x174   :  { %863 = vset.pattern.permute.xlu1 %v901_v42 }
 0x175   :  { %746 = vperm.xlu1 %863, %v920_v2  }
 0x1b8   :  { %v392_v43 = vpop.permute.xlu1 %391  ;;  %v396_v44 = vpop.permute.xlu0 %395 }
 0x1bc   :  { %v394_v45 = vpop.permute.xlu1 %393 }
 0x1bd   :  { %v399_v46 = vsel %vm144_vm3, %v392_v43, %v394_v45  ;;  %v400_v47 = vsel %vm144_vm3, %v394_v45, %v396_v44 }
 0x1be   :  { %v1169_v49 = vadd.f32 %v399_v46, %v376_v38  ;;  %v1171_v50 = vadd.f32 %v400_v47, %v377_v33 }
 0x1c0   :  { %v398_v37 = vpop.permute.xlu1 %397 }
 0x1c1   :  { %v401_v51 = vsel %vm144_vm3, %v396_v44, %v398_v37 }
 0x1c2   :  { %v1174_v52 = vadd.f32 %v401_v51, %v378_v41 }
 0x1c9   :  { %v410_v54 = vpop.permute.xlu0 %409 }
 0x1ca   :  { %v412_v55 = vmul.f32 %v1019_v58, %v410_v54  ;;  %v413_v56 = vmul.f32 %v997_v48, %v410_v54  ;;  %v414_v59 = vmul.f32 %v1030_v61, %v410_v54  ;;  %v415_v62 = vmul.f32 %v1008_v53, %v410_v54 }
 0x1cc   :  { %420 = vrot.lane.b32.xlu0 %v412_v55, %s885_s22  ;;  %422 = vrot.lane.b32.xlu1 %v413_v56, %s885_s22 }
 0x1ce   :  { %v602_v31 = vpop.permute.xlu0 %601 }
 0x1cf   :  { %v604_v16 = vmul.f32 %v1196_v1, %v602_v31  ;;  %v605_v7 = vmul.f32 %v1205_v22, %v602_v31  ;;  %v606_v11 = vmul.f32 %v1210_v23, %v602_v31  ;;  %v607_v20 = vmul.f32 %v1219_v27, %v602_v31 }
 0x1d0   :  { %424 = vrot.lane.b32.xlu0 %v414_v59, %s885_s22  ;;  %426 = vrot.lane.b32.xlu1 %v415_v62, %s885_s22 }
 0x1d1   :  { %v544_v60 = vpop.permute.xlu1 %543 }
 0x1d2   :  { %v546_v18 = vmul.f32 %v1196_v1, %v544_v60  ;;  %v548_v26 = vmul.f32 %v1210_v23, %v544_v60  ;;  %v549_v28 = vmul.f32 %v1219_v27, %v544_v60 }
 0x1d3   :  { %v660_v24 = vpop.permute.xlu0 %659 }
 0x1d4   :  { %v662_v19 = vmul.f32 %v1196_v1, %v660_v24  ;;  %v663_v36 = vmul.f32 %v1205_v22, %v660_v24  ;;  %v664_v38 = vmul.f32 %v1210_v23, %v660_v24  ;;  %v665_v33 = vmul.f32 %v1219_v27, %v660_v24 }
 0x1d6   :  { %v573_v3 = vpop.permute.xlu1 %572 }
 0x1d7   :  { %v575_v30 = vmul.f32 %v1196_v1, %v573_v3  ;;  %v576_v57 = vmul.f32 %v1205_v22, %v573_v3  ;;  %v577_v32 = vmul.f32 %v1210_v23, %v573_v3  ;;  %v578_v25 = vmul.f32 %v1219_v27, %v573_v3 }
 0x1d8   :  { %v497_v44 = vpop.permute.xlu0 %496 }
 0x1d9   :  { %v499_v46 = vmul.f32 %v1019_v58, %v497_v44  ;;  %v500_v47 = vmul.f32 %v997_v48, %v497_v44  ;;  %v501_v37 = vmul.f32 %v1030_v61, %v497_v44  ;;  %v502_v54 = vmul.f32 %v1008_v53, %v497_v44 }
 0x1db   :  { %v631_v4 = vpop.permute.xlu1 %630 }
 0x1dc   :  { %v633_v34 = vmul.f32 %v1196_v1, %v631_v4  ;;  %v634_v21 = vmul.f32 %v1205_v22, %v631_v4  ;;  %v635_v29 = vmul.f32 %v1210_v23, %v631_v4  ;;  %v636_v35 = vmul.f32 %v1219_v27, %v631_v4 }
 0x1e0   :  { %v439_v5 = vpop.permute.xlu1 %438 }
 0x1e1   :  { %v442_v8 = vmul.f32 %v997_v48, %v439_v5  ;;  %v441_v9 = vmul.f32 %v1019_v58, %v439_v5  ;;  %v444_v10 = vmul.f32 %v1008_v53, %v439_v5  ;;  %v443_v12 = vmul.f32 %v1030_v61, %v439_v5 }
 0x1e3   :  { %451 = vrot.lane.b32.xlu1 %v442_v8, %s886_s23  ;;  %449 = vrot.lane.b32.xlu0 %v441_v9, %s886_s23 }
 0x1e5   :  { %v468_v13 = vpop.permute.xlu1 %467 }
 0x1e6   :  { %v470_v14 = vmul.f32 %v1019_v58, %v468_v13  ;;  %v471_v15 = vmul.f32 %v997_v48, %v468_v13  ;;  %v472_v39 = vmul.f32 %v1030_v61, %v468_v13  ;;  %v473_v41 = vmul.f32 %v1008_v53, %v468_v13 }
 0x1e7   :  { %455 = vrot.lane.b32.xlu1 %v444_v10, %s886_s23  ;;  %453 = vrot.lane.b32.xlu0 %v443_v12, %s886_s23 }
 0x1ea   :  { %v689_v17 = vpop.permute.xlu1 %688 }
 0x1eb   :  { %529 = vperm.xlu0 %864, %v920_v2   ;;  %478 = vrot.lane.b32.xlu1 %v470_v14, %s887_s24  ;;  %v547_v2 = vmul.f32 %v1205_v22, %v544_v60  ;;  %v691_v40 = vmul.f32 %v1196_v1, %v689_v17  ;;  %v693_v43 = vmul.f32 %v1210_v23, %v689_v17 }
 0x1ec   :  { %v694_v45 = vmul.f32 %v1219_v27, %v689_v17 }
 0x1ef   :  { %554 = vrot.lane.b32.xlu0 %v546_v18, %s881_s16  ;;  %480 = vrot.lane.b32.xlu1 %v471_v15, %s887_s24  ;;  %v718_v51 = vpop.permute.xlu1 %717 }
 0x1f0   :  { %865 = vset.pattern.permute.xlu0 %v901_v42  ;;  %v692_v42 = vmul.f32 %v1205_v22, %v689_v17  ;;  %v720_v55 = vmul.f32 %v1196_v1, %v718_v51  ;;  %v721_v58 = vmul.f32 %v1205_v22, %v718_v51  ;;  %v722_v56 = vmul.f32 %v1210_v23, %v718_v51 }
 0x1f1   :  { %v723_v61 = vmul.f32 %v1219_v27, %v718_v51 }
 0x1f3   :  { %558 = vrot.lane.b32.xlu0 %v548_v26, %s881_s16  ;;  %556 = vrot.lane.b32.xlu1 %v547_v2, %s881_s16 }
 0x1f4   :  { %v747_v48 = vpop.permute.xlu1 %746 }
 0x1f5   :  { %v749_v53 = vmul.f32 %v1196_v1, %v747_v48  ;;  %v750_v59 = vmul.f32 %v1205_v22, %v747_v48  ;;  %v751_v62 = vmul.f32 %v1210_v23, %v747_v48  ;;  %v752_v60 = vmul.f32 %v1219_v27, %v747_v48 }
 0x1f7   :  { %583 = vrot.lane.b32.xlu0 %v575_v30, %s882_s19  ;;  %560 = vrot.lane.b32.xlu1 %v549_v28, %s881_s16 }
 0x1fb   :  { %587 = vrot.lane.b32.xlu0 %v577_v32, %s882_s19  ;;  %585 = vrot.lane.b32.xlu1 %v576_v57, %s882_s19 }
 0x1ff   :  { %612 = vrot.lane.b32.xlu0 %v604_v16, %s883_s20  ;;  %589 = vrot.lane.b32.xlu1 %v578_v25, %s882_s19 }
 0x203   :  { %616 = vrot.lane.b32.xlu0 %v606_v11, %s883_s20  ;;  %614 = vrot.lane.b32.xlu1 %v605_v7, %s883_s20 }
 0x207   :  { %641 = vrot.lane.b32.xlu0 %v633_v34, %s884_s21  ;;  %618 = vrot.lane.b32.xlu1 %v607_v20, %s883_s20 }
 0x20b   :  { %645 = vrot.lane.b32.xlu0 %v635_v29, %s884_s21  ;;  %643 = vrot.lane.b32.xlu1 %v634_v21, %s884_s21 }
 0x20f   :  { %670 = vrot.lane.b32.xlu0 %v662_v19, %s885_s22  ;;  %647 = vrot.lane.b32.xlu1 %v636_v35, %s884_s21 }
 0x213   :  { %674 = vrot.lane.b32.xlu0 %v664_v38, %s885_s22  ;;  %672 = vrot.lane.b32.xlu1 %v663_v36, %s885_s22 }
 0x217   :  { %482 = vrot.lane.b32.xlu0 %v472_v39, %s887_s24  ;;  %676 = vrot.lane.b32.xlu1 %v665_v33, %s885_s22 }
 0x21b   :  { %484 = vrot.lane.b32.xlu1 %v473_v41, %s887_s24  ;;  %699 = vrot.lane.b32.xlu0 %v691_v40, %s886_s23 }
 0x21f   :  { %701 = vrot.lane.b32.xlu1 %v692_v42, %s886_s23  ;;  %703 = vrot.lane.b32.xlu0 %v693_v43, %s886_s23 }
 0x223   :  { %705 = vrot.lane.b32.xlu1 %v694_v45, %s886_s23  ;;  %507 = vrot.lane.b32.xlu0 %v499_v46, %s888_s27 }
 0x227   :  { %509 = vrot.lane.b32.xlu1 %v500_v47, %s888_s27  ;;  %511 = vrot.lane.b32.xlu0 %v501_v37, %s888_s27 }
 0x22b   :  { %513 = vrot.lane.b32.xlu1 %v502_v54, %s888_s27  ;;  %728 = vrot.lane.b32.xlu0 %v720_v55, %s887_s24 }
 0x22f   :  { %730 = vrot.lane.b32.xlu1 %v721_v58, %s887_s24  ;;  %732 = vrot.lane.b32.xlu0 %v722_v56, %s887_s24 }
 0x233   :  { %734 = vrot.lane.b32.xlu1 %v723_v61, %s887_s24  ;;  %757 = vrot.lane.b32.xlu0 %v749_v53, %s888_s27 }
 0x237   :  { %759 = vrot.lane.b32.xlu1 %v750_v59, %s888_s27  ;;  %761 = vrot.lane.b32.xlu0 %v751_v62, %s888_s27 }
 0x23b   :  { %763 = vrot.lane.b32.xlu1 %v752_v60, %s888_s27 }
 0x23e   :  { %v421_v3 = vpop.permute.xlu0 %420  ;;  %v423_v4 = vpop.permute.xlu1 %422 }
 0x23f   :  { %v428_v5 = vsel %vm174_vm4, %v421_v3, %v423_v4 }
 0x240   :  { %v434_v8 = vadd.f32 %v428_v5, %v1169_v49 }
 0x242   :  { %v425_v9 = vpop.permute.xlu0 %424  ;;  %v427_v10 = vpop.permute.xlu1 %426 }
 0x243   :  { %v429_v12 = vsel %vm174_vm4, %v423_v4, %v425_v9  ;;  %v430_v13 = vsel %vm174_vm4, %v425_v9, %v427_v10 }
 0x244   :  { %v435_v14 = vadd.f32 %v429_v12, %v1171_v50  ;;  %v436_v15 = vadd.f32 %v430_v13, %v1174_v52 }
 0x255   :  { %v450_v18 = vpop.permute.xlu0 %449  ;;  %v452_v2 = vpop.permute.xlu1 %451 }
 0x256   :  { %v457_v26 = vsel %vm204_vm5, %v450_v18, %v452_v2 }
 0x257   :  { %v463_v27 = vadd.f32 %v457_v26, %v434_v8 }
 0x259   :  { %v454_v28 = vpop.permute.xlu0 %453  ;;  %v456_v30 = vpop.permute.xlu1 %455 }
 0x25a   :  { %v458_v31 = vsel %vm204_vm5, %v452_v2, %v454_v28  ;;  %v459_v49 = vsel %vm204_vm5, %v454_v28, %v456_v30 }
 0x25b   :  { %v464_v57 = vadd.f32 %v458_v31, %v435_v14  ;;  %v465_v32 = vadd.f32 %v459_v49, %v436_v15 }
 0x25d   :  { %v479_v16 = vpop.permute.xlu1 %478 }
 0x261   :  { %v481_v25 = vpop.permute.xlu1 %480 }
 0x262   :  { %v486_v7 = vsel %vm234_vm6, %v479_v16, %v481_v25 }
 0x263   :  { %v492_v50 = vadd.f32 %v486_v7, %v463_v27 }
 0x265   :  { %v557_v11 = vpop.permute.xlu1 %556 }
 0x269   :  { %v561_v52 = vpop.permute.xlu1 %560 }
 0x26a   :  { %v530_v20 = vpop.permute.xlu0 %529 }
 0x26b   :  { %v532_v4 = vmul.f32 %v1196_v1, %v530_v20  ;;  %v533_v9 = vmul.f32 %v1205_v22, %v530_v20  ;;  %v534_v28 = vmul.f32 %v1210_v23, %v530_v20 }
 0x26d   :  { %v586_v34 = vpop.permute.xlu1 %585 }
 0x26e   :  { %v555_v24 = vpop.permute.xlu0 %554 }
 0x26f   :  { %v562_v62 = vsel %vm54_vm0, %v555_v24, %v557_v11 }
 0x270   :  { %v568_v12 = vadd.f32 %v562_v62, %v532_v4 }
 0x271   :  { %v590_v21 = vpop.permute.xlu1 %589 }
 0x272   :  { %v559_v29 = vpop.permute.xlu0 %558 }
 0x273   :  { %v563_v13 = vsel %vm54_vm0, %v557_v11, %v559_v29  ;;  %v564_v2 = vsel %vm54_vm0, %v559_v29, %v561_v52 }
 0x274   :  { %v569_v49 = vadd.f32 %v563_v13, %v533_v9  ;;  %v570_v16 = vadd.f32 %v564_v2, %v534_v28 }
 0x275   :  { %v615_v19 = vpop.permute.xlu1 %614 }
 0x276   :  { %v584_v35 = vpop.permute.xlu0 %583 }
 0x277   :  { %v591_v10 = vsel %vm84_vm1, %v584_v35, %v586_v34 }
 0x278   :  { %v597_v22 = vadd.f32 %v591_v10, %v568_v12 }
 0x279   :  { %v619_v36 = vpop.permute.xlu1 %618 }
 0x27a   :  { %v588_v38 = vpop.permute.xlu0 %587 }
 0x27d   :  { %v644_v33 = vpop.permute.xlu1 %643 }
 0x27e   :  { %v613_v17 = vpop.permute.xlu0 %612 }
 0x27f   :  { %v620_v26 = vsel %vm114_vm2, %v613_v17, %v615_v19 }
 0x281   :  { %v648_v39 = vpop.permute.xlu1 %647 }
 0x282   :  { %v617_v40 = vpop.permute.xlu0 %616 }
 0x283   :  { %v621_v23 = vsel %vm114_vm2, %v615_v19, %v617_v40  ;;  %v622_v20 = vsel %vm114_vm2, %v617_v40, %v619_v36 }
 0x285   :  { %v673_v41 = vpop.permute.xlu1 %672 }
 0x286   :  { %v642_v42 = vpop.permute.xlu0 %641 }
 0x289   :  { %v677_v43 = vpop.permute.xlu1 %676 }
 0x28a   :  { %v646_v44 = vpop.permute.xlu0 %645 }
 0x28d   :  { %v485_v45 = vpop.permute.xlu1 %484 }
 0x28e   :  { %v671_v46 = vpop.permute.xlu0 %670 }
 0x28f   :  { %v678_v24 = vsel %vm174_vm4, %v671_v46, %v673_v41 }
 0x291   :  { %v1303_v47 = vpop.permute.xlu1 %701 }
 0x292   :  { %v675_v37 = vpop.permute.xlu0 %674 }
 0x293   :  { %v679_v19 = vsel %vm174_vm4, %v673_v41, %v675_v37  ;;  %v680_v36 = vsel %vm174_vm4, %v675_v37, %v677_v43 }
 0x295   :  { %v706_v51 = vpop.permute.xlu1 %705 }
 0x296   :  { %v483_v54 = vpop.permute.xlu0 %482 }
 0x297   :  { %v487_v55 = vsel %vm234_vm6, %v481_v25, %v483_v54  ;;  %v488_v60 = vsel %vm234_vm6, %v483_v54, %v485_v45  ;;  %v626_v25 = vadd.f32 %v620_v26, %v597_v22 }
 0x298   :  { %v493_v58 = vadd.f32 %v487_v55, %v464_v57  ;;  %v494_v14 = vadd.f32 %v488_v60, %v465_v32  ;;  %v592_v57 = vsel %vm84_vm1, %v586_v34, %v588_v38  ;;  %v593_v32 = vsel %vm84_vm1, %v588_v38, %v590_v21 }
 0x299   :  { %v510_v56 = vpop.permute.xlu1 %509  ;;  %v598_v29 = vadd.f32 %v592_v57, %v569_v49  ;;  %v599_v34 = vadd.f32 %v593_v32, %v570_v16  ;;  %v650_v21 = vsel %vm144_vm3, %v644_v33, %v646_v44  ;;  %v651_v38 = vsel %vm144_vm3, %v646_v44, %v648_v39 }
 0x29a   :  { %v700_v48 = vpop.permute.xlu0 %699 }
 0x29b   :  { %v627_v17 = vadd.f32 %v621_v23, %v598_v29 }
 0x29d   :  { %v514_v53 = vpop.permute.xlu1 %513  ;;  %v656_v46 = vadd.f32 %v650_v21, %v627_v17 }
 0x29e   :  { %v704_v61 = vpop.permute.xlu0 %703 }
 0x29f   :  { %v709_v39 = vsel %vm204_vm5, %v704_v61, %v706_v51  ;;  %v685_v44 = vadd.f32 %v679_v19, %v656_v46 }
 0x2a1   :  { %v731_v8 = vpop.permute.xlu1 %730 }
 0x2a2   :  { %v508_v59 = vpop.permute.xlu0 %507 }
 0x2a3   :  { %v515_v3 = vsel %vm264_vm7, %v508_v59, %v510_v56 }
 0x2a4   :  { %v521_v5 = vadd.f32 %v515_v3, %v492_v50 }
 0x2a5   :  { %v735_v52 = vpop.permute.xlu1 %734 }
 0x2a6   :  { %v774_v15 = vadd.f32 %v521_v5, %v1126_v63  ;;  %v512_v18 = vpop.permute.xlu0 %511  ;;  %v649_v63 = vsel %vm144_vm3, %v642_v42, %v644_v33  ;;  %v708_v33 = vsel %vm204_vm5, %v1303_v47, %v704_v61 }
 0x2a7   :  { %v516_v27 = vsel %vm264_vm7, %v510_v56, %v512_v18  ;;  %v517_v1 = vsel %vm264_vm7, %v512_v18, %v514_v53  ;;  %v655_v35 = vadd.f32 %v649_v63, %v626_v25  ;;  %v714_v37 = vadd.f32 %v708_v33, %v685_v44 }
 0x2a8   :  { %v522_v30 = vadd.f32 %v516_v27, %v493_v58  ;;  %v523_v31 = vadd.f32 %v517_v1, %v494_v14 }
 0x2a9   :  { %v684_v42 = vadd.f32 %v678_v24, %v655_v35  ;;  %v760_v58 = vpop.permute.xlu1 %759 }
 0x2aa   :  { %v775_v7 = vadd.f32 %v522_v30, %v1128_v0  ;;  %v776_v50 = vadd.f32 %v523_v31, %v1133_v6  ;;  %v729_v11 = vpop.permute.xlu0 %728  ;;  %v707_v0 = vsel %vm204_vm5, %v700_v48, %v1303_v47  ;;  %v628_v6 = vadd.f32 %v622_v20, %v599_v34 }
 0x2ab   :  { %v736_v40 = vsel %vm234_vm6, %v729_v11, %v731_v8  ;;  %v713_v55 = vadd.f32 %v707_v0, %v684_v42 }
 0x2ac   :  { %v657_v54 = vadd.f32 %v651_v38, %v628_v6 }
 0x2ad   :  { %v742_v48 = vadd.f32 %v736_v40, %v713_v55  ;;  %v764_v9 = vpop.permute.xlu1 %763 }
 0x2ae   :  { %v733_v45 = vpop.permute.xlu0 %732  ;;  %v686_v56 = vadd.f32 %v680_v36, %v657_v54 }
 0x2af   :  { %v737_v59 = vsel %vm234_vm6, %v731_v8, %v733_v45  ;;  %v738_v41 = vsel %vm234_vm6, %v733_v45, %v735_v52 }
 0x2b0   :  { %v715_v62 = vadd.f32 %v709_v39, %v686_v56  ;;  %v743_v3 = vadd.f32 %v737_v59, %v714_v37 }
 0x2b2   :  { %v758_v53 = vpop.permute.xlu0 %757  ;;  %v744_v4 = vadd.f32 %v738_v41, %v715_v62 }
 0x2b3   :  { %v765_v43 = vsel %vm264_vm7, %v758_v53, %v760_v58 }
 0x2b4   :  { %v771_v60 = vadd.f32 %v765_v43, %v742_v48 }
 0x2b6   :  { %v777_v5 = vadd.f32 %v774_v15, %v771_v60  ;;  %v762_v47 = vpop.permute.xlu0 %761 }
 0x2b7   :  { %v766_v51 = vsel %vm264_vm7, %v760_v58, %v762_v47  ;;  %v767_v61 = vsel %vm264_vm7, %v762_v47, %v764_v9 }
 0x2b8   :  { %780 = vst [vmem:[%s1353_s2] sm:$0xff] %v777_v5  ;;  %v772_v8 = vadd.f32 %v766_v51, %v743_v3  ;;  %v773_v10 = vadd.f32 %v767_v61, %v744_v4 }
 0x2ba   :  { %v778_v12 = vadd.f32 %v775_v7, %v772_v8  ;;  %v779_v13 = vadd.f32 %v776_v50, %v773_v10 }
 0x2bc   :  { %781 = vst [vmem:[%s1353_s2 + $0x8] sm:$0xff] %v778_v12  ;;  %782 = vst [vmem:[%s1353_s2 + $0x10] sm:$0xff] %v779_v13 }

</bundles_post_ra>
